<compile_context>
chip_gen: v6e
topology: v6e:2x2x1
jax: 0.10.0
libtpu: 0.0.40
codegen_flags: <defaults>
</compile_context>

<pallas_src>
import functools

import jax
import jax.numpy as jnp
from jax import lax
from jax.experimental import pallas as pl
from jax.experimental.pallas import tpu as pltpu

_NEG = -1e30     # finite "-inf": exp underflows to exactly 0, never NaN
_EPS2 = 1e-24    # F.normalize(eps=1e-12), applied to the *squared* norm


def _round_up(x, m):
    return (x + m - 1) // m * m


def _cosface_kernel(emb_ref, wt_ref, invw_ref, labels_ref, loss_ref,
                    emb_n_ref, m_ref, l_ref, t_ref,
                    *, scale, scaled_margin, num_classes):
    c = pl.program_id(1)
    nc = pl.num_programs(1)
    tb = emb_ref.shape[0]
    tc = wt_ref.shape[1]

    # Once per batch tile (class tile 0): L2-normalize the embeddings, fold the
    # softmax scale in, store in MXU dtype, reset the online-LSE state.
    @pl.when(c == 0)
    def _init():
        emb = emb_ref[...].astype(jnp.float32)
        inv_e = lax.rsqrt(
            jnp.maximum(jnp.sum(emb * emb, axis=1, keepdims=True), _EPS2))
        emb_n_ref[...] = (emb * (scale * inv_e)).astype(emb_n_ref.dtype)
        m_ref[...] = jnp.full((tb, 1), _NEG, jnp.float32)
        l_ref[...] = jnp.zeros((tb, 1), jnp.float32)
        t_ref[...] = jnp.zeros((tb, 1), jnp.float32)

    # Scaled cosine logits: canonical (M,K)x(K,N) MXU contraction with f32
    # accumulation; the precomputed per-class inverse norm is applied
    # post-matmul as a cheap broadcast column scale.
    s = lax.dot_general(emb_n_ref[...], wt_ref[...],
                        (((1,), (0,)), ((), ())),
                        preferred_element_type=jnp.float32) * invw_ref[...]

    labels = labels_ref[...]                                        # (tb, 1)
    cls = c * tc + lax.broadcasted_iota(jnp.int32, (tb, tc), 1)
    is_tgt = cls == labels
    # CosFace margin: subtract scale*margin at the target class only.
    s = jnp.where(is_tgt, s - scaled_margin, s)
    if num_classes % tc != 0:
        # Padded classes only exist in this (static) case; exp(_NEG - m) == 0
        # so no second mask on the exp below is needed.
        s = jnp.where(cls < num_classes, s, _NEG)

    # Target logit lives in exactly one class tile.
    t_ref[...] += jnp.sum(jnp.where(is_tgt, s, 0.0), axis=1, keepdims=True)

    # Online logsumexp across class tiles.
    m_prev = m_ref[...]
    m_new = jnp.maximum(m_prev, jnp.max(s, axis=1, keepdims=True))
    l_ref[...] = (jnp.exp(m_prev - m_new) * l_ref[...]
                  + jnp.sum(jnp.exp(s - m_new), axis=1, keepdims=True))
    m_ref[...] = m_new

    # Last class tile: per-row loss = logsumexp - target_logit.
    @pl.when(c == nc - 1)
    def _finalize():
        loss_ref[...] = m_ref[...] + jnp.log(l_ref[...]) - t_ref[...]


def cosface_loss(embeddings, weight, labels, *, margin=0.35, scale=30.0,
                 block_b=None, block_c=None, mxu_dtype=None,
                 vmem_limit_bytes=None):
    """CosFace loss (mean CE). embeddings (B,E), weight (C,E), labels (B,)."""
    B, E = embeddings.shape
    C, E_w = weight.shape
    assert E == E_w

    # MXU operand dtype: bf16 for f32 inputs (f32 accumulate) halves the
    # dominant weight HBM stream and uses the fast MXU path.
    if mxu_dtype is None:
        mxu_dtype = (jnp.bfloat16 if embeddings.dtype == jnp.float32
                     else embeddings.dtype)

    # Tile sizes: big batch tiles cut the number of full streaming passes over
    # W (intensity ~ block_b FLOPs/byte on the weight); big class tiles
    # amortize the ~0.35us per-grid-step overhead.
    if block_b is None:
        block_b = min(512, _round_up(B, 8))
    if block_c is None:
        block_c = min(1024, _round_up(C, 128))
    block_b = max(8, _round_up(block_b, 8))
    block_c = max(128, _round_up(block_c, 128))

    # Pad E only when it is not lane-aligned (zeros change neither dot
    # products nor norms).  The class pad rides on the (E,C) transpose copy we
    # build anyway; the batch dim is left ragged (invalid rows never read back).
    e_pad = E if E % 128 == 0 else _round_up(E, 128)
    c_pad = _round_up(C, block_c)
    nb = pl.cdiv(B, block_b)
    nc = c_pad // block_c

    # Per-class inverse norms, computed once (cheap (C,) vector).
    wf32 = weight.astype(jnp.float32)
    inv_w = lax.rsqrt(jnp.maximum(jnp.sum(wf32 * wf32, axis=1), _EPS2))
    inv_w = jnp.pad(inv_w, (0, c_pad - C)).reshape(1, c_pad)

    # Canonical (K,N) RHS for the MXU: (E, C) layout, padded classes zeroed,
    # cast to the MXU dtype (half the HBM bytes for f32 inputs).
    # TODO(synk): store the classifier weight as (E, C) bf16 to skip this copy.
    w_t = jnp.pad(weight.astype(mxu_dtype).T,
                  ((0, e_pad - E), (0, c_pad - C)))
    emb_p = (embeddings if e_pad == E
             else jnp.pad(embeddings, ((0, 0), (0, e_pad - E))))
    labels2d = labels.reshape(B, 1).astype(jnp.int32)

    if vmem_limit_bytes is None:
        itm = jnp.dtype(mxu_dtype).itemsize
        need = (2 * e_pad * block_c * itm                      # W double buffer
                + 2 * block_b * e_pad * emb_p.dtype.itemsize   # emb double buffer
                + block_b * e_pad * itm)                       # emb_n scratch
        # 2x headroom, capped at 56 MiB so v7x (64 MiB VMEM) is always safe.
        vmem_limit_bytes = int(max(32 << 20, min(56 << 20, 2 * need)))

    kernel = functools.partial(_cosface_kernel, scale=scale,
                               scaled_margin=scale * margin, num_classes=C)

    per_row = pl.pallas_call(
        kernel,
        out_shape=jax.ShapeDtypeStruct((B, 1), jnp.float32),
        grid_spec=pltpu.PrefetchScalarGridSpec(
            num_scalar_prefetch=0,
            grid=(nb, nc),    # batch tiles (parallel), class tiles (reduction, last)
            in_specs=[
                pl.BlockSpec((block_b, e_pad), lambda b, c: (b, 0)),  # embeddings
                pl.BlockSpec((e_pad, block_c), lambda b, c: (0, c)),  # W^T tile
                pl.BlockSpec((1, block_c), lambda b, c: (0, c)),      # 1/||w_c||
                pl.BlockSpec((block_b, 1), lambda b, c: (b, 0)),      # labels
            ],
            out_specs=pl.BlockSpec((block_b, 1), lambda b, c: (b, 0)),
            scratch_shapes=[
                pltpu.VMEM((block_b, e_pad), mxu_dtype),   # scale * emb / ||emb||
                pltpu.VMEM((block_b, 1), jnp.float32),     # running max
                pltpu.VMEM((block_b, 1), jnp.float32),     # running sum
                pltpu.VMEM((block_b, 1), jnp.float32),     # target logit
            ],
        ),
        compiler_params=pltpu.CompilerParams(
            dimension_semantics=("parallel", "arbitrary"),
            vmem_limit_bytes=vmem_limit_bytes,
        ),
    )(emb_p, w_t, inv_w, labels2d)

    return jnp.mean(per_row)


def _xavier_uniform(key, shape):
    # nn.init.xavier_uniform_ on (class_num, embedding_size): gain=1.
    fan_out, fan_in = shape
    bound = jnp.sqrt(6.0 / (fan_in + fan_out))
    return jax.random.uniform(key, shape, jnp.float32, minval=-bound, maxval=bound)


if __name__ == "__main__":
    # Small shapes that still exercise: a ragged last batch tile (12 % 8),
    # multiple class tiles, a partially valid last class tile (300 % 128),
    # and the E pad (32 -> 128).
    B, E, C = 12, 32, 300
    margin, scale = 0.35, 30.0

    key = jax.random.PRNGKey(0)
    k_emb, k_w, k_lab = jax.random.split(key, 3)
    embeddings = jax.random.normal(k_emb, (B, E), dtype=jnp.float32)
    weight = _xavier_uniform(k_w, (C, E))
    labels = jax.random.randint(k_lab, (B,), 0, C, dtype=jnp.int32)

    # Pure-JAX reference (same math as the PyTorch module).
    emb_n = embeddings / jnp.maximum(
        jnp.linalg.norm(embeddings, axis=1, keepdims=True), 1e-12)
    w_n = weight / jnp.maximum(
        jnp.linalg.norm(weight, axis=1, keepdims=True), 1e-12)
    logits = jnp.matmul(emb_n, w_n.T, precision=lax.Precision.HIGHEST)
    onehot = jax.nn.one_hot(labels, C, dtype=jnp.float32)
    logits = scale * (logits - margin * onehot)
    ref = jnp.mean(jax.nn.logsumexp(logits, axis=1)
                   - jnp.sum(logits * onehot, axis=1))

    # f32 MXU operands: tight correctness check.
    loss_f32 = cosface_loss(embeddings, weight, labels, margin=margin,
                            scale=scale, block_b=8, block_c=128,
                            mxu_dtype=jnp.float32)
    jax.block_until_ready(loss_f32)
    assert jnp.allclose(loss_f32, ref, atol=1e-4, rtol=1e-4), (loss_f32, ref)

    # Default performance path (bf16 MXU operands, f32 accumulate): looser tol.
    loss_bf16 = cosface_loss(embeddings, weight, labels, margin=margin,
                             scale=scale, block_b=8, block_c=128)
    jax.block_until_ready(loss_bf16)
    assert jnp.allclose(loss_bf16, ref, atol=5e-2, rtol=2e-2), (loss_bf16, ref)

    print("KERNEL_OK")
</pallas_src>

<mosaic_0001>
module attributes {stable_mosaic.version = 11 : i64} {
  func.func @_cosface_kernel(%arg0: i32, %arg1: i32, %arg2: memref<8x128xf32, #tpu.memory_space<vmem>>, %arg3: memref<128x128xf32, #tpu.memory_space<vmem>>, %arg4: memref<1x128xf32, #tpu.memory_space<vmem>>, %arg5: memref<8x1xi32, #tpu.memory_space<vmem>>, %arg6: memref<8x1xf32, #tpu.memory_space<vmem>>, %arg7: memref<8x128xf32, #tpu.memory_space<vmem>>, %arg8: memref<8x1xf32, #tpu.memory_space<vmem>>, %arg9: memref<8x1xf32, #tpu.memory_space<vmem>>, %arg10: memref<8x1xf32, #tpu.memory_space<vmem>>) attributes {dimension_semantics = [#tpu.dimension_semantics<parallel>, #tpu.dimension_semantics<arbitrary>], iteration_bounds = array<i64: 2, 3>, scalar_prefetch = 0 : i64, scratch_operands = 4 : i64, tpu.core_type = #tpu.core_type<tc>, window_params = [{transform_indices = @transform_0, window_bounds = array<i64: 8, 128>}, {transform_indices = @transform_1, window_bounds = array<i64: 128, 128>}, {transform_indices = @transform_2, window_bounds = array<i64: 1, 128>}, {transform_indices = @transform_3, window_bounds = array<i64: 8, 1>}, {transform_indices = @transform_4, window_bounds = array<i64: 8, 1>}]} {
    %c0_i32 = arith.constant 0 : i32
    %0 = arith.cmpi eq, %arg1, %c0_i32 : i32
    %1 = arith.extui %0 : i1 to i32
    %c0_i32_0 = arith.constant 0 : i32
    %2 = arith.cmpi ne, %1, %c0_i32_0 : i32
    scf.if %2 {
      %c0_27 = arith.constant 0 : index
      %c0_28 = arith.constant 0 : index
      %49 = vector.load %arg2[%c0_27, %c0_28] : memref<8x128xf32, #tpu.memory_space<vmem>>, vector<8x128xf32>
      %50 = arith.mulf %49, %49 : vector<8x128xf32>
      %cst_29 = arith.constant dense<0.000000e+00> : vector<8xf32>
      %51 = vector.multi_reduction <add>, %50, %cst_29 [1] : vector<8x128xf32> to vector<8xf32>
      %52 = vector.shape_cast %51 : vector<8xf32> to vector<8x1xf32>
      %cst_30 = arith.constant 1.000000e-24 : f32
      %53 = vector.broadcast %cst_30 : f32 to vector<8x1xf32>
      %54 = arith.maximumf %52, %53 : vector<8x1xf32>
      %55 = math.rsqrt %54 : vector<8x1xf32>
      %cst_31 = arith.constant 3.000000e+01 : f32
      %56 = vector.broadcast %cst_31 : f32 to vector<8x1xf32>
      %57 = arith.mulf %56, %55 : vector<8x1xf32>
      %58 = vector.broadcast %57 : vector<8x1xf32> to vector<8x128xf32>
      %59 = arith.mulf %49, %58 : vector<8x128xf32>
      %c0_32 = arith.constant 0 : index
      %c0_33 = arith.constant 0 : index
      %60 = vector.load %arg7[%c0_32, %c0_33] : memref<8x128xf32, #tpu.memory_space<vmem>>, vector<8x128xf32>
      tpu.vector_store %arg7[%c0_32, %c0_33], %59 {strides = array<i32>} : memref<8x128xf32, #tpu.memory_space<vmem>>, vector<8x128xf32>,
      %cst_34 = arith.constant -1.000000e+30 : f32
      %61 = vector.broadcast %cst_34 : f32 to vector<8x1xf32>
      %c0_35 = arith.constant 0 : index
      %c0_36 = arith.constant 0 : index
      %62 = vector.load %arg8[%c0_35, %c0_36] : memref<8x1xf32, #tpu.memory_space<vmem>>, vector<8x1xf32>
      tpu.vector_store %arg8[%c0_35, %c0_36], %61 {strides = array<i32>} : memref<8x1xf32, #tpu.memory_space<vmem>>, vector<8x1xf32>,
      %cst_37 = arith.constant 0.000000e+00 : f32
      %63 = vector.broadcast %cst_37 : f32 to vector<8x1xf32>
      %c0_38 = arith.constant 0 : index
      %c0_39 = arith.constant 0 : index
      %64 = vector.load %arg9[%c0_38, %c0_39] : memref<8x1xf32, #tpu.memory_space<vmem>>, vector<8x1xf32>
      tpu.vector_store %arg9[%c0_38, %c0_39], %63 {strides = array<i32>} : memref<8x1xf32, #tpu.memory_space<vmem>>, vector<8x1xf32>,
      %cst_40 = arith.constant 0.000000e+00 : f32
      %65 = vector.broadcast %cst_40 : f32 to vector<8x1xf32>
      %c0_41 = arith.constant 0 : index
      %c0_42 = arith.constant 0 : index
      %66 = vector.load %arg10[%c0_41, %c0_42] : memref<8x1xf32, #tpu.memory_space<vmem>>, vector<8x1xf32>
      tpu.vector_store %arg10[%c0_41, %c0_42], %65 {strides = array<i32>} : memref<8x1xf32, #tpu.memory_space<vmem>>, vector<8x1xf32>,
    } else {
    }
    %c0 = arith.constant 0 : index
    %c0_1 = arith.constant 0 : index
    %3 = vector.load %arg7[%c0, %c0_1] : memref<8x128xf32, #tpu.memory_space<vmem>>, vector<8x128xf32>
    %c0_2 = arith.constant 0 : index
    %c0_3 = arith.constant 0 : index
    %4 = vector.load %arg3[%c0_2, %c0_3] : memref<128x128xf32, #tpu.memory_space<vmem>>, vector<128x128xf32>
    %cst = arith.constant dense<0.000000e+00> : vector<8x128xf32>
    %5 = tpu.matmul %3, %4, %cst {dimension_numbers = #tpu.dot_dimension_numbers<[1], [0], [0], [1], [0, 0, 1, 1], [], []>} : vector<8x128xf32>, vector<128x128xf32>, vector<8x128xf32> -> vector<8x128xf32>
    %c0_4 = arith.constant 0 : index
    %c0_5 = arith.constant 0 : index
    %6 = vector.load %arg4[%c0_4, %c0_5] : memref<1x128xf32, #tpu.memory_space<vmem>>, vector<1x128xf32>
    %7 = vector.broadcast %6 : vector<1x128xf32> to vector<8x128xf32>
    %8 = arith.mulf %5, %7 : vector<8x128xf32>
    %c0_6 = arith.constant 0 : index
    %c0_7 = arith.constant 0 : index
    %9 = vector.load %arg5[%c0_6, %c0_7] : memref<8x1xi32, #tpu.memory_space<vmem>>, vector<8x1xi32>
    %c128_i32 = arith.constant 128 : i32
    %10 = arith.muli %arg1, %c128_i32 : i32
    %11 = tpu.iota {dimensions = array<i32: 1>} : vector<8x128xi32>
    %12 = vector.broadcast %10 : i32 to vector<8x128xi32>
    %13 = arith.addi %12, %11 : vector<8x128xi32>
    %14 = vector.broadcast %9 : vector<8x1xi32> to vector<8x128xi32>
    %15 = arith.cmpi eq, %13, %14 : vector<8x128xi32>
    %cst_8 = arith.constant 1.050000e+01 : f32
    %16 = vector.broadcast %cst_8 : f32 to vector<8x128xf32>
    %17 = arith.subf %8, %16 : vector<8x128xf32>
    %18 = arith.select %15, %17, %8 : vector<8x128xi1>, vector<8x128xf32>
    %c300_i32 = arith.constant 300 : i32
    %19 = vector.broadcast %c300_i32 : i32 to vector<8x128xi32>
    %20 = arith.cmpi slt, %13, %19 : vector<8x128xi32>
    %cst_9 = arith.constant -1.000000e+30 : f32
    %21 = vector.broadcast %cst_9 : f32 to vector<8x128xf32>
    %22 = arith.select %20, %18, %21 : vector<8x128xi1>, vector<8x128xf32>
    %c0_10 = arith.constant 0 : index
    %c0_11 = arith.constant 0 : index
    %23 = vector.load %arg10[%c0_10, %c0_11] : memref<8x1xf32, #tpu.memory_space<vmem>>, vector<8x1xf32>
    %cst_12 = arith.constant 0.000000e+00 : f32
    %24 = vector.broadcast %cst_12 : f32 to vector<8x128xf32>
    %25 = arith.select %15, %22, %24 : vector<8x128xi1>, vector<8x128xf32>
    %cst_13 = arith.constant dense<0.000000e+00> : vector<8xf32>
    %26 = vector.multi_reduction <add>, %25, %cst_13 [1] : vector<8x128xf32> to vector<8xf32>
    %27 = vector.shape_cast %26 : vector<8xf32> to vector<8x1xf32>
    %28 = arith.addf %23, %27 : vector<8x1xf32>
    %c0_14 = arith.constant 0 : index
    %c0_15 = arith.constant 0 : index
    %29 = vector.load %arg10[%c0_14, %c0_15] : memref<8x1xf32, #tpu.memory_space<vmem>>, vector<8x1xf32>
    tpu.vector_store %arg10[%c0_14, %c0_15], %28 {strides = array<i32>} : memref<8x1xf32, #tpu.memory_space<vmem>>, vector<8x1xf32>,
    %c0_16 = arith.constant 0 : index
    %c0_17 = arith.constant 0 : index
    %30 = vector.load %arg8[%c0_16, %c0_17] : memref<8x1xf32, #tpu.memory_space<vmem>>, vector<8x1xf32>
    %cst_18 = arith.constant dense<0xFF800000> : vector<8xf32>
    %31 = vector.multi_reduction <maximumf>, %22, %cst_18 [1] : vector<8x128xf32> to vector<8xf32>
    %32 = vector.shape_cast %31 : vector<8xf32> to vector<8x1xf32>
    %33 = arith.maximumf %30, %32 : vector<8x1xf32>
    %34 = arith.subf %30, %33 : vector<8x1xf32>
    %35 = math.exp %34 : vector<8x1xf32>
    %c0_19 = arith.constant 0 : index
    %c0_20 = arith.constant 0 : index
    %36 = vector.load %arg9[%c0_19, %c0_20] : memref<8x1xf32, #tpu.memory_space<vmem>>, vector<8x1xf32>
    %37 = arith.mulf %35, %36 : vector<8x1xf32>
    %38 = vector.broadcast %33 : vector<8x1xf32> to vector<8x128xf32>
    %39 = arith.subf %22, %38 : vector<8x128xf32>
    %40 = math.exp %39 : vector<8x128xf32>
    %cst_21 = arith.constant dense<0.000000e+00> : vector<8xf32>
    %41 = vector.multi_reduction <add>, %40, %cst_21 [1] : vector<8x128xf32> to vector<8xf32>
    %42 = vector.shape_cast %41 : vector<8xf32> to vector<8x1xf32>
    %43 = arith.addf %37, %42 : vector<8x1xf32>
    %c0_22 = arith.constant 0 : index
    %c0_23 = arith.constant 0 : index
    %44 = vector.load %arg9[%c0_22, %c0_23] : memref<8x1xf32, #tpu.memory_space<vmem>>, vector<8x1xf32>
    tpu.vector_store %arg9[%c0_22, %c0_23], %43 {strides = array<i32>} : memref<8x1xf32, #tpu.memory_space<vmem>>, vector<8x1xf32>,
    %c0_24 = arith.constant 0 : index
    %c0_25 = arith.constant 0 : index
    %45 = vector.load %arg8[%c0_24, %c0_25] : memref<8x1xf32, #tpu.memory_space<vmem>>, vector<8x1xf32>
    tpu.vector_store %arg8[%c0_24, %c0_25], %33 {strides = array<i32>} : memref<8x1xf32, #tpu.memory_space<vmem>>, vector<8x1xf32>,
    %c2_i32 = arith.constant 2 : i32
    %46 = arith.cmpi eq, %arg1, %c2_i32 : i32
    %47 = arith.extui %46 : i1 to i32
    %c0_i32_26 = arith.constant 0 : i32
    %48 = arith.cmpi ne, %47, %c0_i32_26 : i32
    scf.if %48 {
      %c0_27 = arith.constant 0 : index
      %c0_28 = arith.constant 0 : index
      %49 = vector.load %arg8[%c0_27, %c0_28] : memref<8x1xf32, #tpu.memory_space<vmem>>, vector<8x1xf32>
      %c0_29 = arith.constant 0 : index
      %c0_30 = arith.constant 0 : index
      %50 = vector.load %arg9[%c0_29, %c0_30] : memref<8x1xf32, #tpu.memory_space<vmem>>, vector<8x1xf32>
      %51 = math.log %50 : vector<8x1xf32>
      %52 = arith.addf %49, %51 : vector<8x1xf32>
      %c0_31 = arith.constant 0 : index
      %c0_32 = arith.constant 0 : index
      %53 = vector.load %arg10[%c0_31, %c0_32] : memref<8x1xf32, #tpu.memory_space<vmem>>, vector<8x1xf32>
      %54 = arith.subf %52, %53 : vector<8x1xf32>
      %c0_33 = arith.constant 0 : index
      %c0_34 = arith.constant 0 : index
      %55 = vector.load %arg6[%c0_33, %c0_34] : memref<8x1xf32, #tpu.memory_space<vmem>>, vector<8x1xf32>
      tpu.vector_store %arg6[%c0_33, %c0_34], %54 {strides = array<i32>} : memref<8x1xf32, #tpu.memory_space<vmem>>, vector<8x1xf32>,
    } else {
    }
    return
  }
  func.func @transform_0(%arg0: i32, %arg1: i32) -> (i32, i32) {
    %c0_i32 = arith.constant 0 : i32
    %c0_i32_0 = arith.constant 0 : i32
    return %arg0, %c0_i32 : i32, i32
  }
  func.func @transform_1(%arg0: i32, %arg1: i32) -> (i32, i32) {
    %c0_i32 = arith.constant 0 : i32
    %c0_i32_0 = arith.constant 0 : i32
    return %c0_i32, %arg1 : i32, i32
  }
  func.func @transform_2(%arg0: i32, %arg1: i32) -> (i32, i32) {
    %c0_i32 = arith.constant 0 : i32
    %c0_i32_0 = arith.constant 0 : i32
    return %c0_i32, %arg1 : i32, i32
  }
  func.func @transform_3(%arg0: i32, %arg1: i32) -> (i32, i32) {
    %c0_i32 = arith.constant 0 : i32
    %c0_i32_0 = arith.constant 0 : i32
    return %arg0, %c0_i32 : i32, i32
  }
  func.func @transform_4(%arg0: i32, %arg1: i32) -> (i32, i32) {
    %c0_i32 = arith.constant 0 : i32
    %c0_i32_0 = arith.constant 0 : i32
    return %arg0, %c0_i32 : i32, i32
  }
}

</mosaic_0001>

<bundles_post_ra>
// kernel: tpu_custom_call.1
= control target key start
LH: loop header
LB: loop body
LE: loop exit
PB: predicated region body
PF: predicated region fallthrough
CT: control target
= control target key end

     0   :  { %9 = vsyncpa [#allocation7], 0  ;;  %s1017_s0 = inlined_call_operand.vmem [shape: f32[12,128], index: 0, kind: input, shape index: {}]   ;;  %s1018_s1 = inlined_call_operand.hbm [shape: f32[128,384], index: 1, kind: input, shape index: {}]   ;;  %s1019_s2 = inlined_call_operand.vmem [shape: f32[1,384], index: 2, kind: input, shape index: {}]   ;;  %s1020_s3 = inlined_call_operand.vmem [shape: s32[12,1], index: 3, kind: input, shape index: {}]   ;;  %s1021_s4 = inlined_call_operand.vmem [shape: f32[12,1], index: 4, kind: output, shape index: {}]  }
   0x1   :  { %11 = vsyncpa [#allocation7 + $0x1], 0  ;;  %s840_s15 = smov 0   ;;  %s842_s16 = smov 0  }
   0x2   :  { %s844_s17 = smov 0   ;;  %s846_s18 = smov 0  }
   0x3   :  { %s848_s19 = smov 0   ;;  %s850_s20 = smov 0  }
   0x4   :  { %s852_s21 = smov 0   ;;  %s854_s22 = smov 0  }
   0x5 LB: > { %s551_s23 = sadd.s32 4294967295, %s804_s22   ;;  %s26_s24 = sadd.s32 1, %s796_s20  ;;  %s804_s22 = sphi %s854_s22, %s17_s22   ;;  %s800_s21 = sphi %s852_s21, %s1031_s21   ;;  %s796_s20 = sphi %s850_s20, %s1030_s20   ;;  %s792_s19 = sphi %s848_s19, %s1029_s19   ;;  %s788_s18 = sphi %s846_s18, %s1028_s18   ;;  %s784_s17 = sphi %s844_s17, %s1027_s17   ;;  %s780_s16 = sphi %s842_s16, %s1026_s16   ;;  %s776_s15 = sphi %s840_s15, %s1025_s15  }
   0x6   : > { %p27_p0 = scmp.ge.s32.totalorder %s26_s24, 3  ;;  %s29_s25 = sadd.s32 1, %s800_s21 }
   0x7   : > { %s62_s26 = sadd.s32 1, %s784_s17  ;;  %p69_p1 = scmp.ne.s32.totalorder %s784_s17, %s780_s16 }
   0x8   : > { %s1033_s24 = smov (%p27_p0, %s26_s24), 0  ;;  %s1035_s25 = smov (!%p27_p0, %s29_s25), %s800_s21 }
   0x9   : > { %s59_s27 = ssub.s32 %s796_s20, %s1033_s24  ;;  %p70_p2 = scmp.eq.s32.totalorder %s804_s22, 0 }
   0xa   : > { %p31_p3 = scmp.ge.s32.totalorder %s1035_s25, 2  ;;  %p60_p4 = scmp.eq.s32.totalorder %s59_s27, 0 }
   0xb   : > { %p890_p5 = por %p70_p2, %p69_p1  ;;  %p75_p6 = scmp.ne.s32.totalorder %s780_s16, %s776_s15 }
   0xc   : > { %s1037_s25 = smov (%p31_p3, %s1035_s25), 0  ;;  %p76_p7 = scmp.eq.s32.totalorder %s551_s23, 0 }
   0xd   : > { %s898_s29 = scalar_select %p60_p4, %s784_s17, %s62_s26  }
   0xe   : > { %p627_p8 = scmp.lt.s32.totalorder %s804_s22, 6  ;;  %s184_s30 = sand.u32 1, %s784_s17  }
   0xf   : > { %p902_p9 = por %p76_p7, %p75_p6  ;;  %s555_s6 = sshll.u32 %s184_s30, 7 }
  0x10   : > { %s556_s7 = sshll.u32 %s796_s20, 7  ;;  %s188_s11 = scalar_lea.vmem [#allocation6], %s555_s6 }
  0x11   : > { %s193_s10 = scalar_lea.hbm %s1018_s1, %s556_s7  ;;  %s194_s12 = sshll.u32 %s188_s11, 4  ;;  %s195_s12 = int_to_ptr.vmem [resolvable:$true] %s194_s12 }
  0x12   : > { %p912_p10 = pnand %p627_p8, %p890_p5  ;;  %p557_p11 = scmp.ge.s32.totalorder %s804_s22, 1 }
  0x13   : > { %s185_s14 = scalar_lea.sflag [#allocation7], %s184_s30  ;;  %s723_s15 = scalar_lea.vmem %s195_s12, 2048 }
  0x14   : > { %p712_p12 = pneg %p912_p10  ;;  %p724_p13 = scmp.ne.s32.totalorder %s195_s12, %s723_s15 }
  0x15   : > { %s806_s23 = smov [#allocation6]  }
  0x16   : > { %p726_p0 = pnand %p724_p13, %p712_p12  ;;  %s728_s26 = sshll.u32 %s806_s23, 4  ;;  %s729_s26 = int_to_ptr.vmem [resolvable:$false] %s728_s26 }
  0x17   : > { %s730_s27 = scalar_lea.vmem %s729_s26, 4096  ;;  %p731_p2 = scmp.lt.s32.totalorder %s195_s12, %s729_s26 }
  0x18   : > { %p727_p1 = pneg %p726_p0  ;;  %p732_p3 = scmp.lt.s32.totalorder %s730_s27, %s723_s15 }
  0x1a   : > { %p733_p4 = por %p732_p3, %p731_p2 }
  0x1c   : > { %p734_p5 = pnand %p733_p4, %p727_p1 }
  0x1e   : > { %737 = shalt.err (!%p734_p5)
}
  0x1f   : > { %s807_s28 = smov 384   ;;  %s808_s30 = smov 128  }
  0x20   : > { %s809_s6 = smov 8   ;;  %p215_p6 = scmp.lt.s32.totalorder %s804_s22, 7 }
  0x21   : > { %626 = dma.hbm_to_vmem [thread:$0]  (!%p912_p10), %s193_s10, 2048, %s195_s12, %s185_s14, %s807_s28, %s808_s30, %s809_s6  }
  0x22   : > { %p216_p7 = pnand %p557_p11, %p215_p6 }
  0x23   : > { %s221_s7 = sand.u32 (!%p216_p7), 1, %s780_s16  }
  0x24   : > { %219 = sbr.rel (%p216_p7) target bundleno = 896 (0x380), region = 36  ;;  %s558_s8 = sshll.u32 (!%p216_p7), %s221_s7, 7 }
  0x25   : > { %s222_s9 = scalar_lea.sflag (!%p216_p7), [#allocation7], %s221_s7  ;;  %s925_s11 = scalar_lea.vmem (!%p216_p7), [#allocation6], %s558_s8 }
  0x29   : > { %771 = dma.done.wait (%p902_p9), %s222_s9, 2048  }
  0x2a   : > { %773 = vsyncadd (%p902_p9), %s222_s9, 4294965248  ;;  %p260_p8 = scmp.lt.s32.totalorder %s792_s19, 1  ;;  %p264_p10 = scmp.lt.s32.totalorder %s788_s18, 2 }
  0x2b   : > { %p562_p9 = scmp.ne.s32.totalorder %s788_s18, 0 }
  0x2c   : > { %s1039_s19 = smov (!%p260_p8, %s792_s19), 1 }
  0x2d   : > { %s935_s10 = scalar_select %p264_p10, %s788_s18, 2 }
  0x2e   : > { %s937_s12 = sshll.u32 %s1039_s19, 3  ;;  %278 = sbr.rel (%p562_p9) target bundleno = 213 (0xd5), region = 44 }
  0x2f   : > { %s263_s5 = scalar_lea.vmem %s1017_s0, %s937_s12  ;;  %s266_s26 = scalar_lea.vmem %s1019_s2, %s935_s10 }
  0x30   : > { %s270_s30 = scalar_lea.vmem %s1020_s3, %s937_s12  ;;  %s274_s19 = scalar_lea.vmem %s1021_s4, %s937_s12 }
  0x33   : > { %v279_v0 = vld [vmem:[%s263_s5] sm:$0xff]  ;;  %vm288_vm0 = vcmask 7168   ;;  %v810_v2 = vmov -1e+30   ;;  %v811_v3 = vmov 0.0  }
  0x34   : > { %v280_v1 = vmul.f32 %v279_v0, %v279_v0  ;;  %289 = vst.msk [vmem:[#allocation3] sm:$0xff] %vm288_vm0, %v810_v2  ;;  %290 = vst.msk [vmem:[#allocation4] sm:$0xff] %vm288_vm0, %v811_v3 }
  0x35   : > { %291 = vst.msk [vmem:[#allocation5] sm:$0xff] %vm288_vm0, %v811_v3 }
  0x36   : > { %281 = vadd.xlane.f32.xlu0 %v280_v1 }
  0xbf   : > { %v282_v4 = vpop.xlane.xlu0 %281 }
  0xc0   : > { %v283_v5 = vmax.f32 %v282_v4, 1e-24 }
  0xc2   : > { %700 = vrsqrt.f32 %v283_v5 }
  0xcf   : > { %v701_v6 = vpop.eup %700 }
  0xd0   : > { %v285_v7 = vmul.f32 30.0, %v701_v6 }
  0xd2   : > { %v286_v8 = vmul.f32 %v285_v7, %v279_v0 }
  0xd4   : > { %287 = vst [vmem:[#allocation2] sm:$0xff] %v286_v8 }
  0xd5 PF: > { %v308_v9 = vld [vmem:[%s925_s11 + $0x78] sm:$0xff]  ;;  %v812_v10 = vmov 0.0   ;;  %v307_v11 = vld [vmem:[%s925_s11 + $0x70] sm:$0xff]  ;;  %vm813_vm1 = vmmov 0   ;;  %v814_v12 = vmov 0   ;;  %v306_v13 = vld [vmem:[%s925_s11 + $0x68] sm:$0xff]  ;;  %v389_v29 = vlaneseq }
  0xd6   : > { %586 = vmatprep.subr.mxu0 %v812_v10  ;;  %618 = vmatprep.mubr.msk.f32.mxu0 %vm813_vm1, %v812_v10  ;;  %v305_v14 = vld [vmem:[%s925_s11 + $0x60] sm:$0xff]  ;;  %v304_v16 = vld [vmem:[%s925_s11 + $0x58] sm:$0xff]  ;;  %v303_v17 = vld [vmem:[%s925_s11 + $0x50] sm:$0xff]  ;;  %s564_s13 = sshll.u32 %s788_s18, 7  ;;  %vm406_vm4 = vcmask 7168   ;;  %p566_p11 = scmp.ne.s32.totalorder %s788_s18, 2 }
  0xd7   : > { %587 = vmatpush3.msra.mxu0 %v308_v9  ;;  %702 = vset.pattern.permute.xlu0 %v814_v12  ;;  %v387_v15 = vld [vmem:[%s270_s30] sm:$0xff]  ;;  %v302_v18 = vld [vmem:[%s925_s11 + $0x48] sm:$0xff]  ;;  %v300_v20 = vld [vmem:[%s925_s11 + $0x38] sm:$0xff]  ;;  %v390_v30 = vand.u32 127, %v389_v29  ;;  %v391_v31 = vstv %s564_s13 }
  0xd8   : > { %588 = vmatprep.subr.mxu0 %v812_v10  ;;  %703 = vset.pattern.permute.xlu1 %v814_v12  ;;  %v301_v19 = vld [vmem:[%s925_s11 + $0x40] sm:$0xff]  ;;  %v299_v21 = vld [vmem:[%s925_s11 + $0x30] sm:$0xff]  ;;  %v298_v22 = vld [vmem:[%s925_s11 + $0x28] sm:$0xff] }
  0xd9   : > { %589 = vmatpush3.msra.mxu0 %v307_v11  ;;  %394 = vperm.xlu0 %702, %v387_v15   ;;  %v297_v23 = vld [vmem:[%s925_s11 + $0x20] sm:$0xff]  ;;  %v296_v24 = vld [vmem:[%s925_s11 + $0x18] sm:$0xff]  ;;  %v295_v25 = vld [vmem:[%s925_s11 + $0x10] sm:$0xff]  ;;  %v392_v33 = vadd.s32 %v391_v31, %v390_v30 }
  0xda   : > { %590 = vmatprep.subr.mxu0 %v812_v10  ;;  %v294_v26 = vld [vmem:[%s925_s11 + $0x8] sm:$0xff]  ;;  %v293_v27 = vld [vmem:[%s925_s11] sm:$0xff]  ;;  %v401_v50 = vld [vmem:[#allocation5] sm:$0xff] }
  0xdb   : > { %591 = vmatpush3.msra.mxu0 %v306_v13  ;;  %v292_v28 = vld [vmem:[#allocation2] sm:$0xff]  ;;  %vm399_vm3 = vcmp.lt.s32.totalorder %v392_v33, 300  ;;  %v408_v41 = vld [vmem:[#allocation3] sm:$0xff]  ;;  %v415_v55 = vld [vmem:[#allocation4] sm:$0xff] }
  0xdc   : > { %592 = vmatprep.subr.mxu0 %v812_v10  ;;  %v563_v32 = vld [vmem:[%s266_s26] ss:$0 sm:$0xff] }
  0xdd   : > { %593 = vmatpush3.msra.mxu0 %v305_v14 }
  0xde   : > { %594 = vmatprep.subr.mxu0 %v812_v10 }
  0xdf   : > { %595 = vmatpush3.msra.mxu0 %v304_v16 }
  0xe0   : > { %596 = vmatprep.subr.mxu0 %v812_v10 }
  0xe1   : > { %597 = vmatpush3.msra.mxu0 %v303_v17 }
  0xe2   : > { %598 = vmatprep.subr.mxu0 %v812_v10 }
  0xe3   : > { %599 = vmatpush3.msra.mxu0 %v302_v18 }
  0xe4   : > { %600 = vmatprep.subr.mxu0 %v812_v10 }
  0xe5   : > { %601 = vmatpush3.msra.mxu0 %v301_v19 }
  0xe6   : > { %602 = vmatprep.subr.mxu0 %v812_v10 }
  0xe7   : > { %603 = vmatpush3.msra.mxu0 %v300_v20 }
  0xe8   : > { %604 = vmatprep.subr.mxu0 %v812_v10 }
  0xe9   : > { %605 = vmatpush3.msra.mxu0 %v299_v21 }
  0xea   : > { %606 = vmatprep.subr.mxu0 %v812_v10 }
  0xeb   : > { %607 = vmatpush3.msra.mxu0 %v298_v22 }
  0xec   : > { %608 = vmatprep.subr.mxu0 %v812_v10 }
  0xed   : > { %609 = vmatpush3.msra.mxu0 %v297_v23 }
  0xee   : > { %610 = vmatprep.subr.mxu0 %v812_v10 }
  0xef   : > { %611 = vmatpush3.msra.mxu0 %v296_v24 }
  0xf0   : > { %612 = vmatprep.subr.mxu0 %v812_v10 }
  0xf1   : > { %613 = vmatpush3.msra.mxu0 %v295_v25 }
  0xf2   : > { %614 = vmatprep.subr.mxu0 %v812_v10 }
  0xf3   : > { %615 = vmatpush3.msra.mxu0 %v294_v26 }
  0xf4   : > { %616 = vmatprep.subr.mxu0 %v812_v10 }
  0xf5   : > { %617 = vmatpush3.msra.mxu0 %v293_v27 }
  0xf6   : > { %619 = vmatmul.mubr.f32.vlgmr.msra.gmra.mxu0 %v292_v28 }
 0x154   : > { %v395_v34 = vpop.permute.xlu0 %394 }
 0x155   : > { %vm396_vm2 = vcmp.eq.s32.totalorder %v392_v33, %v395_v34 }
 0x1b6   : > { %v375_v35 = vpop.f32.mrf.mxu0 }
 0x1b7   : > { %v386_v36 = vmul.f32 %v563_v32, %v375_v35 }
 0x1b8   : > { %v620_v37 = vpop.f32.mrf.mxu0 }
 0x1b9   : > { %v565_v38 = vadd.f32 -10.5, %v386_v36 }
 0x1bb   : > { %v398_v39 = vsel %vm396_vm2, %v565_v38, %v386_v36 }
 0x1bc   : > { %v400_v40 = vsel %vm399_vm3, %v398_v39, -1e+30 }
 0x1bd   : > { %409 = vmax.xlane.f32.xlu0 %v400_v40  ;;  %v402_v45 = vsel %vm396_vm2, %v400_v40, 0.0 }
 0x246   : > { %v410_v42 = vpop.xlane.xlu0 %409 }
 0x247   : > { %v411_v43 = vmax.f32 %v408_v41, %v410_v42 }
 0x249   : > { %v412_v44 = vsub.f32 %v408_v41, %v411_v43  ;;  %429 = vst.msk [vmem:[#allocation3] sm:$0xff] %vm406_vm4, %v411_v43  ;;  %419 = vperm.xlu1 %703, %v411_v43  }
 0x24b   : > { %v413_v53 = vmul.f32 1.442695, %v412_v44 }
 0x26d   : > { %403 = vadd.xlane.f32.xlu1 %v402_v45 }
 0x2c4   : > { %v420_v46 = vpop.permute.xlu1 %419 }
 0x2c5   : > { %v422_v47 = vsub.f32 %v400_v40, %v420_v46 }
 0x2c7   : > { %v423_v48 = vmul.f32 1.442695, %v422_v47 }
 0x2c9   : > { %704 = vpow2.f32 %v423_v48 }
 0x2ca   : > { %706 = vpow2.f32 %v413_v53 }
 0x2d6   : > { %v705_v49 = vpop.eup %704 }
 0x2d7   : > { %425 = vadd.xlane.f32.xlu0 %v705_v49  ;;  %v707_v54 = vpop.eup %706 }
 0x2d8   : > { %v416_v56 = vmul.f32 %v707_v54, %v415_v55 }
 0x2f6   : > { %v404_v51 = vpop.xlane.xlu1 %403 }
 0x2f7   : > { %v405_v52 = vadd.f32 %v404_v51, %v401_v50 }
 0x2f9   : > { %407 = vst.msk [vmem:[#allocation5] sm:$0xff] %vm406_vm4, %v405_v52 }
 0x35f   : > { %433 = sbr.rel (%p566_p11) target bundleno = 896 (0x380), region = 48 }
 0x360   : > { %v426_v57 = vpop.xlane.xlu0 %425 }
 0x361   : > { %v427_v58 = vadd.f32 %v426_v57, %v416_v56 }
 0x363   : > { %428 = vst.msk [vmem:[#allocation4] sm:$0xff] %vm406_vm4, %v427_v58 }
 0x364   : > { %v434_v61 = vld [vmem:[#allocation3] sm:$0xff]  ;;  %v439_v63 = vld [vmem:[#allocation5] sm:$0xff] }
 0x36a   : > { %v435_v59 = vld [vmem:[#allocation4] sm:$0xff] }
 0x36b   : > { %708 = vlog2.f32 %v435_v59 }
 0x378   : > { %v709_v60 = vpop.eup %708 }
 0x379   : > { %v437_v62 = vmul.f32 0.6931472, %v709_v60 }
 0x37b   : > { %v438_v0 = vadd.f32 %v437_v62, %v434_v61 }
 0x37d   : > { %v440_v1 = vsub.f32 %v438_v0, %v439_v63 }
 0x37f   : > { %441 = vst.msk [vmem:[%s274_s19] sm:$0xff] %vm406_vm4, %v440_v1 }
 0x380 PF: > { %s17_s22 = sadd.s32 1, %s804_s22   ;;  %s1025_s15 = smov %s780_s16 }
 0x381   : > { %p14_p12 = scmp.ge.s32.totalorder %s17_s22, 8   ;;  %s1026_s16 = smov %s784_s17 }
 0x382   : > { %s1027_s17 = smov %s898_s29  ;;  %s1028_s18 = smov %s796_s20 }
 0x383   : > { %s1029_s19 = smov %s800_s21  ;;  %s1030_s20 = smov %s1033_s24 }
 0x384   : > { %s1031_s21 = smov %s1037_s25  ;;  %16 = sbr.rel (!%p14_p12) target bundleno = 5 (0x5), region = 93 }
 0x389   :  { %461 = vsyncpa [#allocation7], 1 }
 0x38a   :  { %463 = vsyncpa [#allocation7 + $0x1], 1 }

</bundles_post_ra>
